<compile_context>
chip_gen: v7x
topology: tpu7x:2x2x1
jax: 0.10.0
libtpu: 0.0.40
codegen_flags: <defaults>
</compile_context>

<pallas_src>
import functools

import jax
import jax.numpy as jnp
from jax import lax
from jax.experimental import pallas as pl
from jax.experimental.pallas import tpu as pltpu


def _round_up(x, m):
    return ((x + m - 1) // m) * m


def _pick_tile(padded, candidates):
    for c in candidates:
        if padded % c == 0:
            return c
    return 128  # padded is always a multiple of 128


def _chamfer_kernel(src_ref, dst_ref, fwd_ref, bwd_ref, racc_ref, cacc_ref,
                    *, m_valid, n_valid):
    # src_ref: (1, 8, Mt)  rows = [x, y, z, |s|^2, 1, 0, 0, 0]
    # dst_ref: (1, 8, Nt)  rows = [-2x, -2y, -2z, 1, |d|^2, 0, 0, 0]
    mi = pl.program_id(1)
    ni = pl.program_id(2)
    n_mi = pl.num_programs(1)
    n_ni = pl.num_programs(2)
    m_tile = racc_ref.shape[0]
    n_tile = racc_ref.shape[1]

    # Zero the per-batch partial-sum outputs at the first tile of each batch element.
    @pl.when(jnp.logical_and(mi == 0, ni == 0))
    def _():
        fwd_ref[...] = jnp.zeros_like(fwd_ref)
        bwd_ref[...] = jnp.zeros_like(bwd_ref)

    a = src_ref[0]  # (8, Mt)
    b = dst_ref[0]  # (8, Nt)

    # Full squared-distance tile straight off the MXU:
    #   d2[m, n] = |s_m|^2 + |d_n|^2 - 2 * <s_m, d_n>
    d2 = lax.dot_general(
        a, b, (((0,), (0,)), ((), ())),
        preferred_element_type=jnp.float32,
        precision=lax.Precision.HIGHEST)  # (Mt, Nt) f32

    # ---- forward direction: elementwise running min across N tiles (VPU only) ----
    @pl.when(ni == 0)
    def _():
        racc_ref[...] = d2

    @pl.when(ni != 0)
    def _():
        racc_ref[...] = jnp.minimum(racc_ref[...], d2)

    # ---- backward direction: per-tile min over the M rows, running min across M tiles ----
    col_min = jnp.min(d2, axis=0, keepdims=True)  # (1, Nt)

    @pl.when(mi == 0)
    def _():
        cacc_ref[ni] = col_min

    @pl.when(mi != 0)
    def _():
        cacc_ref[ni] = jnp.minimum(cacc_ref[ni], col_min)

    # ---- finalize forward contribution of this M tile once all N tiles are seen ----
    @pl.when(ni == n_ni - 1)
    def _():
        row_min = jnp.min(racc_ref[...], axis=1, keepdims=True)        # (Mt, 1)
        row_dist = jnp.sqrt(jnp.maximum(row_min, 0.0))                 # sqrt after the min
        row_idx = mi * m_tile + lax.broadcasted_iota(jnp.int32, (m_tile, 1), 0)
        row_dist = jnp.where(row_idx < m_valid, row_dist, 0.0)         # drop padded src points
        fwd_ref[...] = fwd_ref[...] + jnp.sum(row_dist)

    # ---- finalize backward contribution of this N tile once all M tiles are seen ----
    @pl.when(mi == n_mi - 1)
    def _():
        col_best = cacc_ref[ni]                                        # (1, Nt)
        col_dist = jnp.sqrt(jnp.maximum(col_best, 0.0))
        col_idx = ni * n_tile + lax.broadcasted_iota(jnp.int32, (1, n_tile), 1)
        col_dist = jnp.where(col_idx < n_valid, col_dist, 0.0)         # drop padded dst points
        bwd_ref[...] = bwd_ref[...] + jnp.sum(col_dist)


@jax.jit
def chamfer_loss_brute(pc_src, pc_dst):
    """pc_src: (B, 3, M), pc_dst: (B, 3, N) — PyTorch layout. Returns 3 scalars."""
    B, C, M = pc_src.shape
    N = pc_dst.shape[2]
    assert C == 3, "ChamferLoss_Brute assumes 3-D point clouds"

    src = pc_src.astype(jnp.float32)
    dst = pc_dst.astype(jnp.float32)

    # Replicate-pad the point axes to lane multiples: duplicated points never change a
    # minimum; they are excluded from the sums inside the kernel.
    m_pad = _round_up(M, 128)
    n_pad = _round_up(N, 128)
    if m_pad != M:
        src = jnp.pad(src, ((0, 0), (0, 0), (0, m_pad - M)), mode="edge")
    if n_pad != N:
        dst = jnp.pad(dst, ((0, 0), (0, 0), (0, n_pad - N)), mode="edge")

    # Augmented 8-row (sublane-aligned) operands so one MXU contraction yields d2 directly.
    s_sq = jnp.sum(src * src, axis=1, keepdims=True)                   # (B, 1, m_pad)
    d_sq = jnp.sum(dst * dst, axis=1, keepdims=True)                   # (B, 1, n_pad)
    a8 = jnp.concatenate(
        [src, s_sq, jnp.ones_like(s_sq), jnp.zeros((B, 3, m_pad), jnp.float32)], axis=1)
    b8 = jnp.concatenate(
        [-2.0 * dst, jnp.ones_like(d_sq), d_sq, jnp.zeros((B, 3, n_pad), jnp.float32)], axis=1)

    mt = _pick_tile(m_pad, (512, 256, 128))
    nt = _pick_tile(n_pad, (1024, 512, 256, 128))
    n_mi = m_pad // mt
    n_ni = n_pad // nt

    kernel = functools.partial(_chamfer_kernel, m_valid=M, n_valid=N)

    fwd_sums, bwd_sums = pl.pallas_call(
        kernel,
        out_shape=(jax.ShapeDtypeStruct((B, 1, 128), jnp.float32),
                   jax.ShapeDtypeStruct((B, 1, 128), jnp.float32)),
        grid_spec=pltpu.PrefetchScalarGridSpec(
            num_scalar_prefetch=0,
            grid=(B, n_mi, n_ni),
            in_specs=[pl.BlockSpec((1, 8, mt), lambda b, i, j: (b, 0, i)),
                      pl.BlockSpec((1, 8, nt), lambda b, i, j: (b, 0, j))],
            out_specs=[pl.BlockSpec((1, 1, 128), lambda b, i, j: (b, 0, 0)),
                       pl.BlockSpec((1, 1, 128), lambda b, i, j: (b, 0, 0))],
            scratch_shapes=[pltpu.VMEM((mt, nt), jnp.float32),        # running row-wise min
                            pltpu.VMEM((n_ni, 1, nt), jnp.float32)]), # running col-wise min
        compiler_params=pltpu.CompilerParams(
            dimension_semantics=("parallel", "arbitrary", "arbitrary")),
    )(a8, b8)

    fwd_sum = jnp.sum(fwd_sums[:, 0, 0])
    bwd_sum = jnp.sum(bwd_sums[:, 0, 0])
    forward_loss = fwd_sum / (B * M)
    backward_loss = bwd_sum / (B * N)
    loss = forward_loss + backward_loss
    chamfer_pure = loss
    chamfer_weighted = chamfer_pure  # sigma weighting unused in the reference forward
    return loss, chamfer_pure, chamfer_weighted


def _reference(pc_src, pc_dst):
    # Pure-JAX mirror of the PyTorch forward for a correctness check.
    diff = jnp.linalg.norm(
        pc_src[:, :, :, None] - pc_dst[:, :, None, :], axis=1)  # (B, M, N)
    fwd = jnp.mean(jnp.min(diff, axis=2))
    bwd = jnp.mean(jnp.min(diff, axis=1))
    return fwd + bwd


if __name__ == "__main__":
    key = jax.random.PRNGKey(0)
    k1, k2 = jax.random.split(key)
    # Non-multiple-of-128 point counts so padding/masking and multi-tile accumulation
    # (3 M-tiles x 5 N-tiles) are exercised.
    B, M, N = 2, 300, 520
    pc_src = jax.random.normal(k1, (B, 3, M), dtype=jnp.float32)
    pc_dst = jax.random.normal(k2, (B, 3, N), dtype=jnp.float32)

    loss, chamfer_pure, chamfer_weighted = jax.block_until_ready(
        chamfer_loss_brute(pc_src, pc_dst))

    ref = _reference(pc_src, pc_dst)
    assert jnp.allclose(loss, ref, rtol=2e-4, atol=1e-5), (loss, ref)
    assert jnp.allclose(chamfer_pure, loss) and jnp.allclose(chamfer_weighted, loss)

    print("KERNEL_OK")
</pallas_src>

<mosaic_0001>
module attributes {stable_mosaic.version = 11 : i64} {
  func.func @_chamfer_kernel(%arg0: i32, %arg1: i32, %arg2: i32, %arg3: memref<1x8x128xf32, #tpu.memory_space<vmem>>, %arg4: memref<1x8x128xf32, #tpu.memory_space<vmem>>, %arg5: memref<1x1x128xf32, #tpu.memory_space<vmem>>, %arg6: memref<1x1x128xf32, #tpu.memory_space<vmem>>, %arg7: memref<128x128xf32, #tpu.memory_space<vmem>>, %arg8: memref<5x1x128xf32, #tpu.memory_space<vmem>>) attributes {dimension_semantics = [#tpu.dimension_semantics<parallel>, #tpu.dimension_semantics<arbitrary>, #tpu.dimension_semantics<arbitrary>], iteration_bounds = array<i64: 2, 3, 5>, scalar_prefetch = 0 : i64, scratch_operands = 2 : i64, tpu.core_type = #tpu.core_type<tc>, window_params = [{transform_indices = @transform_0, window_bounds = array<i64: 1, 8, 128>}, {transform_indices = @transform_1, window_bounds = array<i64: 1, 8, 128>}, {transform_indices = @transform_2, window_bounds = array<i64: 1, 1, 128>}, {transform_indices = @transform_3, window_bounds = array<i64: 1, 1, 128>}]} {
    %c0_i32 = arith.constant 0 : i32
    %0 = arith.cmpi eq, %arg1, %c0_i32 : i32
    %c0_i32_0 = arith.constant 0 : i32
    %1 = arith.cmpi eq, %arg2, %c0_i32_0 : i32
    %2 = arith.andi %0, %1 : i1
    %3 = arith.extui %2 : i1 to i32
    %c0_i32_1 = arith.constant 0 : i32
    %4 = arith.cmpi ne, %3, %c0_i32_1 : i32
    scf.if %4 {
      %cst_18 = arith.constant 0.000000e+00 : f32
      %30 = vector.broadcast %cst_18 : f32 to vector<1x1x128xf32>
      %c0_19 = arith.constant 0 : index
      %c0_20 = arith.constant 0 : index
      %c0_21 = arith.constant 0 : index
      %31 = vector.load %arg5[%c0_19, %c0_20, %c0_21] : memref<1x1x128xf32, #tpu.memory_space<vmem>>, vector<1x1x128xf32>
      tpu.vector_store %arg5[%c0_19, %c0_20, %c0_21], %30 {strides = array<i32>} : memref<1x1x128xf32, #tpu.memory_space<vmem>>, vector<1x1x128xf32>,
      %cst_22 = arith.constant 0.000000e+00 : f32
      %32 = vector.broadcast %cst_22 : f32 to vector<1x1x128xf32>
      %c0_23 = arith.constant 0 : index
      %c0_24 = arith.constant 0 : index
      %c0_25 = arith.constant 0 : index
      %33 = vector.load %arg6[%c0_23, %c0_24, %c0_25] : memref<1x1x128xf32, #tpu.memory_space<vmem>>, vector<1x1x128xf32>
      tpu.vector_store %arg6[%c0_23, %c0_24, %c0_25], %32 {strides = array<i32>} : memref<1x1x128xf32, #tpu.memory_space<vmem>>, vector<1x1x128xf32>,
    } else {
    }
    %c0 = arith.constant 0 : index
    %c0_2 = arith.constant 0 : index
    %c0_3 = arith.constant 0 : index
    %5 = vector.load %arg3[%c0, %c0_2, %c0_3] : memref<1x8x128xf32, #tpu.memory_space<vmem>>, vector<1x8x128xf32>
    %6 = vector.shape_cast %5 : vector<1x8x128xf32> to vector<8x128xf32>
    %c0_4 = arith.constant 0 : index
    %c0_5 = arith.constant 0 : index
    %c0_6 = arith.constant 0 : index
    %7 = vector.load %arg4[%c0_4, %c0_5, %c0_6] : memref<1x8x128xf32, #tpu.memory_space<vmem>>, vector<1x8x128xf32>
    %8 = vector.shape_cast %7 : vector<1x8x128xf32> to vector<8x128xf32>
    %cst = arith.constant dense<0.000000e+00> : vector<128x128xf32>
    %9 = tpu.matmul %6, %8, %cst {dimension_numbers = #tpu.dot_dimension_numbers<[0], [0], [1], [1], [0, 1, 1, 1], [], []>, precision = #tpu.contract_precision<fp32>} : vector<8x128xf32>, vector<8x128xf32>, vector<128x128xf32> -> vector<128x128xf32>
    %c0_i32_7 = arith.constant 0 : i32
    %10 = arith.cmpi eq, %arg2, %c0_i32_7 : i32
    %11 = arith.extui %10 : i1 to i32
    %c0_i32_8 = arith.constant 0 : i32
    %12 = arith.cmpi ne, %11, %c0_i32_8 : i32
    scf.if %12 {
      %c0_18 = arith.constant 0 : index
      %c0_19 = arith.constant 0 : index
      %30 = vector.load %arg7[%c0_18, %c0_19] : memref<128x128xf32, #tpu.memory_space<vmem>>, vector<128x128xf32>
      tpu.vector_store %arg7[%c0_18, %c0_19], %9 {strides = array<i32>} : memref<128x128xf32, #tpu.memory_space<vmem>>, vector<128x128xf32>,
    } else {
    }
    %c0_i32_9 = arith.constant 0 : i32
    %13 = arith.cmpi ne, %arg2, %c0_i32_9 : i32
    %14 = arith.extui %13 : i1 to i32
    %c0_i32_10 = arith.constant 0 : i32
    %15 = arith.cmpi ne, %14, %c0_i32_10 : i32
    scf.if %15 {
      %c0_18 = arith.constant 0 : index
      %c0_19 = arith.constant 0 : index
      %30 = vector.load %arg7[%c0_18, %c0_19] : memref<128x128xf32, #tpu.memory_space<vmem>>, vector<128x128xf32>
      %31 = arith.minimumf %30, %9 : vector<128x128xf32>
      %c0_20 = arith.constant 0 : index
      %c0_21 = arith.constant 0 : index
      %32 = vector.load %arg7[%c0_20, %c0_21] : memref<128x128xf32, #tpu.memory_space<vmem>>, vector<128x128xf32>
      tpu.vector_store %arg7[%c0_20, %c0_21], %31 {strides = array<i32>} : memref<128x128xf32, #tpu.memory_space<vmem>>, vector<128x128xf32>,
    } else {
    }
    %cst_11 = arith.constant dense<0x7F800000> : vector<128xf32>
    %16 = vector.multi_reduction <minimumf>, %9, %cst_11 [0] : vector<128x128xf32> to vector<128xf32>
    %17 = vector.shape_cast %16 : vector<128xf32> to vector<1x128xf32>
    %c0_i32_12 = arith.constant 0 : i32
    %18 = arith.cmpi eq, %arg1, %c0_i32_12 : i32
    %19 = arith.extui %18 : i1 to i32
    %c0_i32_13 = arith.constant 0 : i32
    %20 = arith.cmpi ne, %19, %c0_i32_13 : i32
    scf.if %20 {
      %30 = arith.index_cast %arg2 : i32 to index
      %c0_18 = arith.constant 0 : index
      %c0_19 = arith.constant 0 : index
      %31 = vector.load %arg8[%30, %c0_18, %c0_19] : memref<5x1x128xf32, #tpu.memory_space<vmem>>, vector<1x1x128xf32>
      %32 = vector.shape_cast %31 : vector<1x1x128xf32> to vector<1x128xf32>
      %33 = vector.shape_cast %17 : vector<1x128xf32> to vector<1x1x128xf32>
      tpu.vector_store %arg8[%30, %c0_18, %c0_19], %33 {strides = array<i32>} : memref<5x1x128xf32, #tpu.memory_space<vmem>>, vector<1x1x128xf32>,
    } else {
    }
    %c0_i32_14 = arith.constant 0 : i32
    %21 = arith.cmpi ne, %arg1, %c0_i32_14 : i32
    %22 = arith.extui %21 : i1 to i32
    %c0_i32_15 = arith.constant 0 : i32
    %23 = arith.cmpi ne, %22, %c0_i32_15 : i32
    scf.if %23 {
      %30 = arith.index_cast %arg2 : i32 to index
      %c0_18 = arith.constant 0 : index
      %c0_19 = arith.constant 0 : index
      %31 = vector.load %arg8[%30, %c0_18, %c0_19] : memref<5x1x128xf32, #tpu.memory_space<vmem>>, vector<1x1x128xf32>
      %32 = vector.shape_cast %31 : vector<1x1x128xf32> to vector<1x128xf32>
      %33 = arith.minimumf %32, %17 : vector<1x128xf32>
      %34 = arith.index_cast %arg2 : i32 to index
      %c0_20 = arith.constant 0 : index
      %c0_21 = arith.constant 0 : index
      %35 = vector.load %arg8[%34, %c0_20, %c0_21] : memref<5x1x128xf32, #tpu.memory_space<vmem>>, vector<1x1x128xf32>
      %36 = vector.shape_cast %35 : vector<1x1x128xf32> to vector<1x128xf32>
      %37 = vector.shape_cast %33 : vector<1x128xf32> to vector<1x1x128xf32>
      tpu.vector_store %arg8[%34, %c0_20, %c0_21], %37 {strides = array<i32>} : memref<5x1x128xf32, #tpu.memory_space<vmem>>, vector<1x1x128xf32>,
    } else {
    }
    %c4_i32 = arith.constant 4 : i32
    %24 = arith.cmpi eq, %arg2, %c4_i32 : i32
    %25 = arith.extui %24 : i1 to i32
    %c0_i32_16 = arith.constant 0 : i32
    %26 = arith.cmpi ne, %25, %c0_i32_16 : i32
    scf.if %26 {
      %c0_18 = arith.constant 0 : index
      %c0_19 = arith.constant 0 : index
      %30 = vector.load %arg7[%c0_18, %c0_19] : memref<128x128xf32, #tpu.memory_space<vmem>>, vector<128x128xf32>
      %cst_20 = arith.constant dense<0x7F800000> : vector<128xf32>
      %31 = vector.multi_reduction <minimumf>, %30, %cst_20 [1] : vector<128x128xf32> to vector<128xf32>
      %32 = vector.shape_cast %31 : vector<128xf32> to vector<128x1xf32>
      %cst_21 = arith.constant 0.000000e+00 : f32
      %33 = vector.broadcast %cst_21 : f32 to vector<128x1xf32>
      %34 = arith.maximumf %32, %33 : vector<128x1xf32>
      %35 = math.sqrt %34 : vector<128x1xf32>
      %c128_i32 = arith.constant 128 : i32
      %36 = arith.muli %arg1, %c128_i32 : i32
      %37 = tpu.iota {dimensions = array<i32: 0>} : vector<128x1xi32>
      %38 = vector.broadcast %36 : i32 to vector<128x1xi32>
      %39 = arith.addi %38, %37 : vector<128x1xi32>
      %c300_i32 = arith.constant 300 : i32
      %40 = vector.broadcast %c300_i32 : i32 to vector<128x1xi32>
      %41 = arith.cmpi slt, %39, %40 : vector<128x1xi32>
      %cst_22 = arith.constant 0.000000e+00 : f32
      %42 = vector.broadcast %cst_22 : f32 to vector<128x1xf32>
      %43 = arith.select %41, %35, %42 : vector<128x1xi1>, vector<128x1xf32>
      %c0_23 = arith.constant 0 : index
      %c0_24 = arith.constant 0 : index
      %c0_25 = arith.constant 0 : index
      %44 = vector.load %arg5[%c0_23, %c0_24, %c0_25] : memref<1x1x128xf32, #tpu.memory_space<vmem>>, vector<1x1x128xf32>
      %45 = vector.shape_cast %43 : vector<128x1xf32> to vector<1x128x1xf32>
      %cst_26 = arith.constant dense<0.000000e+00> : vector<1xf32>
      %46 = vector.multi_reduction <add>, %45, %cst_26 [1, 2] : vector<1x128x1xf32> to vector<1xf32>
      %47 = vector.shape_cast %46 : vector<1xf32> to vector<1x1x1xf32>
      %48 = vector.extract %47[0, 0, 0] : f32 from vector<1x1x1xf32>
      %49 = vector.broadcast %48 : f32 to vector<1x1x128xf32>
      %50 = arith.addf %44, %49 : vector<1x1x128xf32>
      %c0_27 = arith.constant 0 : index
      %c0_28 = arith.constant 0 : index
      %c0_29 = arith.constant 0 : index
      %51 = vector.load %arg5[%c0_27, %c0_28, %c0_29] : memref<1x1x128xf32, #tpu.memory_space<vmem>>, vector<1x1x128xf32>
      tpu.vector_store %arg5[%c0_27, %c0_28, %c0_29], %50 {strides = array<i32>} : memref<1x1x128xf32, #tpu.memory_space<vmem>>, vector<1x1x128xf32>,
    } else {
    }
    %c2_i32 = arith.constant 2 : i32
    %27 = arith.cmpi eq, %arg1, %c2_i32 : i32
    %28 = arith.extui %27 : i1 to i32
    %c0_i32_17 = arith.constant 0 : i32
    %29 = arith.cmpi ne, %28, %c0_i32_17 : i32
    scf.if %29 {
      %30 = arith.index_cast %arg2 : i32 to index
      %c0_18 = arith.constant 0 : index
      %c0_19 = arith.constant 0 : index
      %31 = vector.load %arg8[%30, %c0_18, %c0_19] : memref<5x1x128xf32, #tpu.memory_space<vmem>>, vector<1x1x128xf32>
      %32 = vector.shape_cast %31 : vector<1x1x128xf32> to vector<1x128xf32>
      %cst_20 = arith.constant 0.000000e+00 : f32
      %33 = vector.broadcast %cst_20 : f32 to vector<1x128xf32>
      %34 = arith.maximumf %32, %33 : vector<1x128xf32>
      %35 = math.sqrt %34 : vector<1x128xf32>
      %c128_i32 = arith.constant 128 : i32
      %36 = arith.muli %arg2, %c128_i32 : i32
      %37 = tpu.iota {dimensions = array<i32: 1>} : vector<1x128xi32>
      %38 = vector.broadcast %36 : i32 to vector<1x128xi32>
      %39 = arith.addi %38, %37 : vector<1x128xi32>
      %c520_i32 = arith.constant 520 : i32
      %40 = vector.broadcast %c520_i32 : i32 to vector<1x128xi32>
      %41 = arith.cmpi slt, %39, %40 : vector<1x128xi32>
      %cst_21 = arith.constant 0.000000e+00 : f32
      %42 = vector.broadcast %cst_21 : f32 to vector<1x128xf32>
      %43 = arith.select %41, %35, %42 : vector<1x128xi1>, vector<1x128xf32>
      %c0_22 = arith.constant 0 : index
      %c0_23 = arith.constant 0 : index
      %c0_24 = arith.constant 0 : index
      %44 = vector.load %arg6[%c0_22, %c0_23, %c0_24] : memref<1x1x128xf32, #tpu.memory_space<vmem>>, vector<1x1x128xf32>
      %45 = vector.shape_cast %43 : vector<1x128xf32> to vector<1x1x128xf32>
      %cst_25 = arith.constant dense<0.000000e+00> : vector<1xf32>
      %46 = vector.multi_reduction <add>, %45, %cst_25 [1, 2] : vector<1x1x128xf32> to vector<1xf32>
      %47 = vector.shape_cast %46 : vector<1xf32> to vector<1x1x1xf32>
      %48 = vector.extract %47[0, 0, 0] : f32 from vector<1x1x1xf32>
      %49 = vector.broadcast %48 : f32 to vector<1x1x128xf32>
      %50 = arith.addf %44, %49 : vector<1x1x128xf32>
      %c0_26 = arith.constant 0 : index
      %c0_27 = arith.constant 0 : index
      %c0_28 = arith.constant 0 : index
      %51 = vector.load %arg6[%c0_26, %c0_27, %c0_28] : memref<1x1x128xf32, #tpu.memory_space<vmem>>, vector<1x1x128xf32>
      tpu.vector_store %arg6[%c0_26, %c0_27, %c0_28], %50 {strides = array<i32>} : memref<1x1x128xf32, #tpu.memory_space<vmem>>, vector<1x1x128xf32>,
    } else {
    }
    return
  }
  func.func @transform_0(%arg0: i32, %arg1: i32, %arg2: i32) -> (i32, i32, i32) {
    %c0_i32 = arith.constant 0 : i32
    %c0_i32_0 = arith.constant 0 : i32
    return %arg0, %c0_i32, %arg1 : i32, i32, i32
  }
  func.func @transform_1(%arg0: i32, %arg1: i32, %arg2: i32) -> (i32, i32, i32) {
    %c0_i32 = arith.constant 0 : i32
    %c0_i32_0 = arith.constant 0 : i32
    return %arg0, %c0_i32, %arg2 : i32, i32, i32
  }
  func.func @transform_2(%arg0: i32, %arg1: i32, %arg2: i32) -> (i32, i32, i32) {
    %c0_i32 = arith.constant 0 : i32
    %c0_i32_0 = arith.constant 0 : i32
    %c0_i32_1 = arith.constant 0 : i32
    return %arg0, %c0_i32, %c0_i32_0 : i32, i32, i32
  }
  func.func @transform_3(%arg0: i32, %arg1: i32, %arg2: i32) -> (i32, i32, i32) {
    %c0_i32 = arith.constant 0 : i32
    %c0_i32_0 = arith.constant 0 : i32
    %c0_i32_1 = arith.constant 0 : i32
    return %arg0, %c0_i32, %c0_i32_0 : i32, i32, i32
  }
}

</mosaic_0001>

<bundles_post_ra>
// kernel: chamfer_loss_brute.1
= control target key start
LH: loop header
LB: loop body
LE: loop exit
PB: predicated region body
PF: predicated region fallthrough
CT: control target
= control target key end

     0   :  { %s2498_s12 = smov 0   ;;  %s2500_s13 = smov 0   ;;  %s3151_s0 = inlined_call_operand.vmem [shape: f32[2,8,384], index: 0, kind: input, shape index: {}]   ;;  %s3152_s1 = inlined_call_operand.vmem [shape: f32[2,8,640], index: 1, kind: input, shape index: {}]   ;;  %s3153_s2 = inlined_call_operand.vmem [shape: f32[2,1,128], index: 2, kind: output, shape index: {0}]   ;;  %s3154_s3 = inlined_call_operand.vmem [shape: f32[2,1,128], index: 3, kind: output, shape index: {1}]  }
   0x1   :  { %s2502_s14 = smov 0   ;;  %s2504_s15 = smov 0  }
   0x2   :  { %s2506_s16 = smov 0   ;;  %s2508_s17 = smov 0  }
   0x3   :  { %s2510_s18 = smov 0  }
   0x4 LB: > { %s26_s19 = sadd.s32 1, %s2463_s15  ;;  %s29_s20 = sadd.s32 1, %s2467_s16  ;;  %s2475_s18 = sphi %s2510_s18, %s14_s18   ;;  %s2471_s17 = sphi %s2508_s17, %s3162_s17   ;;  %s2467_s16 = sphi %s2506_s16, %s3161_s16   ;;  %s2463_s15 = sphi %s2504_s15, %s3160_s15   ;;  %s2459_s14 = sphi %s2502_s14, %s3159_s14   ;;  %s2455_s13 = sphi %s2500_s13, %s3158_s13   ;;  %s2451_s12 = sphi %s2498_s12, %s3157_s12  }
   0x5   : > { %p27_p0 = scmp.ge.s32.totalorder %s26_s19, 5  ;;  %p1972_p1 = scmp.ge.s32.totalorder %s2475_s18, 1 }
   0x6   : > { %p179_p2 = scmp.lt.s32.totalorder %s2475_s18, 31  ;;  %s33_s21 = sadd.s32 1, %s2471_s17 }
   0x7   : > { %s3164_s19 = smov (%p27_p0, %s26_s19), 0  ;;  %s3166_s20 = smov (!%p27_p0, %s29_s20), %s2467_s16 }
   0x8   : > { %p180_p3 = pnand %p1972_p1, %p179_p2  ;;  %p31_p4 = scmp.ge.s32.totalorder %s3166_s20, 3 }
   0x9   : > { %p215_p6 = scmp.lt.s32.totalorder (!%p180_p3), %s2459_s14, 1  ;;  %p217_p7 = scmp.lt.s32.totalorder (!%p180_p3), %s2455_s13, 2 }
   0xa   : > { %s3168_s20 = smov (%p31_p4, %s3166_s20), 0  ;;  %s3170_s21 = smov (!%p31_p4, %s33_s21), %s2471_s17 }
   0xb   : > { %p35_p5 = scmp.ge.s32.totalorder %s3170_s21, 2  ;;  %183 = sbr.rel (%p180_p3) target bundleno = 1199 (0x4af), region = 28 }
   0xc   : > { %p225_p8 = scmp.lt.s32.totalorder (!%p180_p3), %s2451_s12, 4  ;;  %p237_p9 = scmp.eq.s32.totalorder (!%p180_p3), %s2455_s13, 0 }
   0xd   : > { %s3172_s21 = smov (%p35_p5, %s3170_s21), 0  ;;  %p238_p10 = scmp.eq.s32.totalorder (!%p180_p3), %s2451_s12, 0 }
   0xe   : > { %3155 = sst [smem:[#allocation4_spill]] %s3172_s21 }
   0xf   : > { %p239_p11 = pnand (!%p180_p3), %p238_p10, %p237_p9 }
  0x12   : > { %s3174_s14 = smov (!%p215_p6, %s2459_s14), 1  ;;  %v2477_v0 = vmov (!%p239_p11), 0.0  }
  0x13   : > { %s218_s22 = scalar_select %p217_p7, %s2455_s13, 2 }
  0x14   : > { %s2323_s23 = smul.u32 3, %s3174_s14  ;;  %s2551_s26 = scalar_lea.vmem %s3153_s2, %s3174_s14 }
  0x15   : > { %s226_s27 = scalar_select %p225_p8, %s2451_s12, 4 }
  0x16   : > { %s220_s28 = sadd.s32 %s2323_s23, %s218_s22  ;;  %s2324_s29 = smul.u32 5, %s3174_s14  ;;  %243 = vst [vmem:[%s2551_s26] sm:$0x1] (!%p239_p11), %v2477_v0 }
  0x17   : > { %s1973_s30 = sshll.u32 %s220_s28, 3  ;;  %s2557_s6 = scalar_lea.vmem %s3154_s3, %s3174_s14 }
  0x18   : > { %s222_s9 = scalar_lea.vmem %s3151_s0, %s1973_s30  ;;  %s228_s10 = sadd.s32 %s2324_s29, %s226_s27  ;;  %244 = vst [vmem:[%s2557_s6] sm:$0x1] (!%p239_p11), %v2477_v0 }
  0x19   : > { %s1974_s11 = sshll.u32 %s228_s10, 3  ;;  %242 = sbr.rel (%p239_p11) target bundleno = 32 (0x20), region = 32 }
  0x1a   : > { %s230_s25 = scalar_lea.vmem %s3152_s1, %s1974_s11 }
  0x20 PF: > { %v245_v1 = vld [vmem:[%s222_s9] sm:$0xff]  ;;  %vm279_vm0 = vcmask 64512   ;;  %p1975_p12 = scmp.ne.s32.totalorder %s2451_s12, 0 }
  0x21   : > { %247 = vxpose.xlu0.b32.start.end [1/1] (short) %v245_v1, 128  ;;  %v246_v2 = vld [vmem:[%s230_s25] sm:$0xff] }
  0x22   : > { %v2572_v3 = vand.u32 4294901760, %v246_v2 }
  0x24   : > { %2165 = vmatprep.subr.mxu0 %v2572_v3  ;;  %2087 = vmatprep.subr.mxu1 %v2572_v3  ;;  %v2579_v4 = vsub.f32 %v246_v2, %v2572_v3 }
  0x25   : > { %2166 = vmatpush3.msra.mxu0 %v2572_v3  ;;  %2088 = vmatpush3.msra.mxu1 %v2572_v3 }
  0x26   : > { %v557_v5 = vand.u32 4294901760, %v2579_v4 }
  0x28   : > { %v558_v6 = vsub.f32 %v2579_v4, %v557_v5  ;;  %2191 = vmatprep.subr.mxu0 %v557_v5 }
  0x2a   : > { %v559_v7 = vand.u32 4294901760, %v558_v6 }
  0x2c   : > { %2113 = vmatprep.subr.mxu1 %v559_v7 }
  0xa1   : > { %v263_v8 = vpop.trf.xlu0 }
  0xa2   : > { %v281_v9 = vsel %vm279_vm0, %v263_v8, 0 }
  0xa3   : > { %v2584_v10 = vand.u32 4294901760, %v281_v9 }
  0xa5   : > { %v2587_v11 = vsub.f32 %v281_v9, %v2584_v10  ;;  %v264_v12 = vpop.trf.xlu0 }
  0xa6   : > { %v284_v13 = vsel %vm279_vm0, %v264_v12, 0 }
  0xa7   : > { %v2590_v14 = vand.u32 4294901760, %v284_v13  ;;  %v396_v15 = vand.u32 4294901760, %v2587_v11 }
  0xa9   : > { %v2594_v16 = vsub.f32 %v284_v13, %v2590_v14  ;;  %2167 = vmatprep.mubr.f32.mxu0 %v396_v15  ;;  %v265_v17 = vpop.trf.xlu0  ;;  %v397_v18 = vsub.f32 %v2587_v11, %v396_v15 }
  0xaa   : > { %v287_v19 = vsel %vm279_vm0, %v265_v17, 0 }
  0xab   : > { %v2598_v20 = vand.u32 4294901760, %v287_v19  ;;  %v398_v21 = vand.u32 4294901760, %v397_v18  ;;  %v406_v22 = vand.u32 4294901760, %v2594_v16 }
  0xad   : > { %v2602_v23 = vsub.f32 %v287_v19, %v2598_v20  ;;  %2089 = vmatprep.mubr.f32.mxu1 %v398_v21  ;;  %2168 = vmatmul.mubr.f32.vlgmr.msra.gmra.mrb[0].mxu0 %v406_v22  ;;  %v266_v24 = vpop.trf.xlu0  ;;  %v407_v25 = vsub.f32 %v2594_v16, %v406_v22 }
  0xae   : > { %v290_v26 = vsel %vm279_vm0, %v266_v24, 0  ;;  %2192 = vmatpush3.msra.mxu0 %v557_v5 }
  0xaf   : > { %v2606_v27 = vand.u32 4294901760, %v290_v26  ;;  %v408_v28 = vand.u32 4294901760, %v407_v25  ;;  %v416_v29 = vand.u32 4294901760, %v2602_v23  ;;  %2217 = vmatprep.subr.mxu0 %v2572_v3 }
  0xb1   : > { %v2611_v30 = vsub.f32 %v290_v26, %v2606_v27  ;;  %2090 = vmatmul.mubr.f32.vlgmr.msra.gmra.mrb[0].mxu1 %v408_v28  ;;  %2170 = vmatprep.mubr.f32.mxu0 %v416_v29  ;;  %v267_v31 = vpop.trf.xlu0  ;;  %v417_v32 = vsub.f32 %v2602_v23, %v416_v29 }
  0xb2   : > { %v293_v33 = vsel %vm279_vm0, %v267_v31, 0  ;;  %2114 = vmatpush3.msra.mxu1 %v559_v7 }
  0xb3   : > { %v2615_v34 = vand.u32 4294901760, %v293_v33  ;;  %v418_v35 = vand.u32 4294901760, %v417_v32  ;;  %v426_v36 = vand.u32 4294901760, %v2611_v30  ;;  %2139 = vmatprep.subr.mxu1 %v2579_v4 }
  0xb5   : > { %v2620_v37 = vsub.f32 %v293_v33, %v2615_v34  ;;  %2092 = vmatprep.mubr.f32.mxu1 %v418_v35  ;;  %2171 = vmatmul.mubr.f32.gmra.mrb[2].mxu0 %v426_v36  ;;  %v268_v38 = vpop.trf.xlu0  ;;  %v427_v39 = vsub.f32 %v2611_v30, %v426_v36 }
  0xb6   : > { %v296_v40 = vsel %vm279_vm0, %v268_v38, 0 }
  0xb7   : > { %v2624_v41 = vand.u32 4294901760, %v296_v40  ;;  %v428_v42 = vand.u32 4294901760, %v427_v39  ;;  %v436_v43 = vand.u32 4294901760, %v2620_v37 }
  0xb9   : > { %v2628_v44 = vsub.f32 %v296_v40, %v2624_v41  ;;  %2093 = vmatmul.mubr.f32.gmra.mrb[2].mxu1 %v428_v42  ;;  %2173 = vmatprep.mubr.f32.mxu0 %v436_v43  ;;  %v269_v45 = vpop.trf.xlu0  ;;  %v437_v46 = vsub.f32 %v2620_v37, %v436_v43 }
  0xba   : > { %v299_v47 = vsel %vm279_vm0, %v269_v45, 0 }
  0xbb   : > { %v2632_v48 = vand.u32 4294901760, %v299_v47  ;;  %v438_v49 = vand.u32 4294901760, %v437_v46  ;;  %v446_v50 = vand.u32 4294901760, %v2628_v44 }
  0xbd   : > { %v2636_v51 = vsub.f32 %v299_v47, %v2632_v48  ;;  %2095 = vmatprep.mubr.f32.mxu1 %v438_v49  ;;  %2174 = vmatmul.mubr.f32.gmra.mrb[4].mxu0 %v446_v50  ;;  %v270_v52 = vpop.trf.xlu0  ;;  %v447_v53 = vsub.f32 %v2628_v44, %v446_v50 }
  0xbe   : > { %v302_v54 = vsel %vm279_vm0, %v270_v52, 0 }
  0xbf   : > { %v2640_v55 = vand.u32 4294901760, %v302_v54  ;;  %v448_v56 = vand.u32 4294901760, %v447_v53  ;;  %v456_v57 = vand.u32 4294901760, %v2636_v51 }
  0xc1   : > { %v2644_v58 = vsub.f32 %v302_v54, %v2640_v55  ;;  %2096 = vmatmul.mubr.f32.gmra.mrb[4].mxu1 %v448_v56  ;;  %2176 = vmatprep.mubr.f32.mxu0 %v456_v57  ;;  %v271_v59 = vpop.trf.xlu0  ;;  %v457_v60 = vsub.f32 %v2636_v51, %v456_v57 }
  0xc2   : > { %v305_v61 = vsel %vm279_vm0, %v271_v59, 0 }
  0xc3   : > { %v2648_v62 = vand.u32 4294901760, %v305_v61  ;;  %v458_v63 = vand.u32 4294901760, %v457_v60  ;;  %v466_v0 = vand.u32 4294901760, %v2644_v58 }
  0xc5   : > { %v2652_v1 = vsub.f32 %v305_v61, %v2648_v62  ;;  %2098 = vmatprep.mubr.f32.mxu1 %v458_v63  ;;  %2177 = vmatmul.mubr.f32.gmra.mrb[6].mxu0 %v466_v0  ;;  %v272_v2 = vpop.trf.xlu0  ;;  %v467_v5 = vsub.f32 %v2644_v58, %v466_v0 }
  0xc6   : > { %v308_v6 = vsel %vm279_vm0, %v272_v2, 0 }
  0xc7   : > { %v2656_v7 = vand.u32 4294901760, %v308_v6  ;;  %v468_v8 = vand.u32 4294901760, %v467_v5  ;;  %v476_v9 = vand.u32 4294901760, %v2652_v1 }
  0xc9   : > { %v2660_v12 = vsub.f32 %v308_v6, %v2656_v7  ;;  %2099 = vmatmul.mubr.f32.gmra.mrb[6].mxu1 %v468_v8  ;;  %2179 = vmatprep.mubr.f32.mxu0 %v476_v9  ;;  %v273_v13 = vpop.trf.xlu0  ;;  %v477_v15 = vsub.f32 %v2652_v1, %v476_v9 }
  0xca   : > { %v311_v17 = vsel %vm279_vm0, %v273_v13, 0 }
  0xcb   : > { %v2664_v18 = vand.u32 4294901760, %v311_v17  ;;  %v478_v19 = vand.u32 4294901760, %v477_v15  ;;  %v486_v21 = vand.u32 4294901760, %v2660_v12 }
  0xcd   : > { %v2668_v22 = vsub.f32 %v311_v17, %v2664_v18  ;;  %2101 = vmatprep.mubr.f32.mxu1 %v478_v19  ;;  %2180 = vmatmul.mubr.f32.gmra.mrb[8].mxu0 %v486_v21  ;;  %v274_v24 = vpop.trf.xlu0  ;;  %v487_v25 = vsub.f32 %v2660_v12, %v486_v21 }
  0xce   : > { %v314_v26 = vsel %vm279_vm0, %v274_v24, 0 }
  0xcf   : > { %v2672_v28 = vand.u32 4294901760, %v314_v26  ;;  %v488_v29 = vand.u32 4294901760, %v487_v25  ;;  %v496_v31 = vand.u32 4294901760, %v2668_v22 }
  0xd1   : > { %v2676_v32 = vsub.f32 %v314_v26, %v2672_v28  ;;  %2102 = vmatmul.mubr.f32.gmra.mrb[8].mxu1 %v488_v29  ;;  %2182 = vmatprep.mubr.f32.mxu0 %v496_v31  ;;  %v275_v33 = vpop.trf.xlu0  ;;  %v497_v35 = vsub.f32 %v2668_v22, %v496_v31 }
  0xd2   : > { %v317_v36 = vsel %vm279_vm0, %v275_v33, 0 }
  0xd3   : > { %v2680_v38 = vand.u32 4294901760, %v317_v36  ;;  %v498_v39 = vand.u32 4294901760, %v497_v35  ;;  %v506_v40 = vand.u32 4294901760, %v2676_v32 }
  0xd5   : > { %v2684_v42 = vsub.f32 %v317_v36, %v2680_v38  ;;  %2104 = vmatprep.mubr.f32.mxu1 %v498_v39  ;;  %2183 = vmatmul.mubr.f32.gmra.mrb[10].mxu0 %v506_v40  ;;  %v276_v43 = vpop.trf.xlu0  ;;  %v507_v45 = vsub.f32 %v2676_v32, %v506_v40 }
  0xd6   : > { %v320_v46 = vsel %vm279_vm0, %v276_v43, 0 }
  0xd7   : > { %v2688_v47 = vand.u32 4294901760, %v320_v46  ;;  %v508_v49 = vand.u32 4294901760, %v507_v45  ;;  %v516_v50 = vand.u32 4294901760, %v2684_v42 }
  0xd9   : > { %v2692_v52 = vsub.f32 %v320_v46, %v2688_v47  ;;  %2105 = vmatmul.mubr.f32.gmra.mrb[10].mxu1 %v508_v49  ;;  %2185 = vmatprep.mubr.f32.mxu0 %v516_v50  ;;  %v277_v53 = vpop.trf.xlu0  ;;  %v517_v54 = vsub.f32 %v2684_v42, %v516_v50 }
  0xda   : > { %v323_v56 = vsel %vm279_vm0, %v277_v53, 0 }
  0xdb   : > { %v2696_v57 = vand.u32 4294901760, %v323_v56  ;;  %v518_v59 = vand.u32 4294901760, %v517_v54  ;;  %v526_v60 = vand.u32 4294901760, %v2692_v52 }
  0xdd   : > { %v2700_v61 = vsub.f32 %v323_v56, %v2696_v57  ;;  %2107 = vmatprep.mubr.f32.mxu1 %v518_v59  ;;  %2186 = vmatmul.mubr.f32.gmra.mrb[12].mxu0 %v526_v60  ;;  %v278_v63 = vpop.trf.xlu0  ;;  %v527_v0 = vsub.f32 %v2692_v52, %v526_v60 }
  0xde   : > { %v326_v2 = vsel %vm279_vm0, %v278_v63, 0 }
  0xdf   : > { %v2704_v5 = vand.u32 4294901760, %v326_v2  ;;  %v528_v6 = vand.u32 4294901760, %v527_v0  ;;  %v536_v8 = vand.u32 4294901760, %v2700_v61 }
  0xe1   : > { %v2708_v9 = vsub.f32 %v326_v2, %v2704_v5  ;;  %2108 = vmatmul.mubr.f32.gmra.mrb[12].mxu1 %v528_v6  ;;  %2188 = vmatprep.mubr.f32.mxu0 %v536_v8  ;;  %v537_v13 = vsub.f32 %v2700_v61, %v536_v8 }
  0xe3   : > { %v538_v15 = vand.u32 4294901760, %v537_v13  ;;  %v546_v17 = vand.u32 4294901760, %v2708_v9 }
  0xe5   : > { %2110 = vmatprep.mubr.f32.mxu1 %v538_v15  ;;  %2189 = vmatmul.mubr.f32.gmra.mrb[14].mxu0 %v546_v17  ;;  %v547_v19 = vsub.f32 %v2708_v9, %v546_v17 }
  0xe6   : > { %2193 = vmatprep.mubr.f32.mxu0 %v2584_v10 }
  0xe7   : > { %v548_v21 = vand.u32 4294901760, %v547_v19 }
  0xe9   : > { %2111 = vmatmul.mubr.f32.gmra.mrb[14].mxu1 %v548_v21  ;;  %2194 = vmatmul.mubr.f32.vlgmr.msra.gmra.mrb[0].mxu0 %v2590_v14 }
  0xea   : > { %2115 = vmatprep.mubr.f32.mxu1 %v2584_v10  ;;  %2196 = vmatprep.mubr.f32.mxu0 %v2598_v20 }
  0xeb   : > { %2218 = vmatpush3.msra.mxu0 %v2572_v3 }
  0xed   : > { %2116 = vmatmul.mubr.f32.vlgmr.msra.gmra.mrb[0].mxu1 %v2590_v14  ;;  %2197 = vmatmul.mubr.f32.gmra.mrb[2].mxu0 %v2606_v27 }
  0xee   : > { %2140 = vmatpush3.msra.mxu1 %v2579_v4  ;;  %2118 = vmatprep.mubr.f32.mxu1 %v2598_v20 }
  0xef   : > { %2199 = vmatprep.mubr.f32.mxu0 %v2615_v34 }
  0xf1   : > { %2119 = vmatmul.mubr.f32.gmra.mrb[2].mxu1 %v2606_v27  ;;  %2200 = vmatmul.mubr.f32.gmra.mrb[4].mxu0 %v2624_v41 }
  0xf2   : > { %2121 = vmatprep.mubr.f32.mxu1 %v2615_v34  ;;  %2202 = vmatprep.mubr.f32.mxu0 %v2632_v48 }
  0xf5   : > { %2122 = vmatmul.mubr.f32.gmra.mrb[4].mxu1 %v2624_v41  ;;  %2203 = vmatmul.mubr.f32.gmra.mrb[6].mxu0 %v2640_v55 }
  0xf6   : > { %2124 = vmatprep.mubr.f32.mxu1 %v2632_v48  ;;  %2205 = vmatprep.mubr.f32.mxu0 %v2648_v62 }
  0xf9   : > { %2125 = vmatmul.mubr.f32.gmra.mrb[6].mxu1 %v2640_v55  ;;  %2206 = vmatmul.mubr.f32.gmra.mrb[8].mxu0 %v2656_v7 }
  0xfa   : > { %2127 = vmatprep.mubr.f32.mxu1 %v2648_v62  ;;  %2208 = vmatprep.mubr.f32.mxu0 %v2664_v18 }
  0xfd   : > { %2128 = vmatmul.mubr.f32.gmra.mrb[8].mxu1 %v2656_v7  ;;  %2209 = vmatmul.mubr.f32.gmra.mrb[10].mxu0 %v2672_v28 }
  0xfe   : > { %2130 = vmatprep.mubr.f32.mxu1 %v2664_v18  ;;  %2211 = vmatprep.mubr.f32.mxu0 %v2680_v38 }
 0x101   : > { %2131 = vmatmul.mubr.f32.gmra.mrb[10].mxu1 %v2672_v28  ;;  %2212 = vmatmul.mubr.f32.gmra.mrb[12].mxu0 %v2688_v47 }
 0x102   : > { %2133 = vmatprep.mubr.f32.mxu1 %v2680_v38  ;;  %2214 = vmatprep.mubr.f32.mxu0 %v2696_v57 }
 0x105   : > { %2134 = vmatmul.mubr.f32.gmra.mrb[12].mxu1 %v2688_v47  ;;  %2215 = vmatmul.mubr.f32.gmra.mrb[14].mxu0 %v2704_v5 }
 0x106   : > { %2136 = vmatprep.mubr.f32.mxu1 %v2696_v57  ;;  %2219 = vmatprep.mubr.f32.mxu0 %v2584_v10 }
 0x109   : > { %2137 = vmatmul.mubr.f32.gmra.mrb[14].mxu1 %v2704_v5  ;;  %2220 = vmatmul.mubr.f32.vlgmr.msra.gmra.mrb[0].mxu0 %v2590_v14 }
 0x10a   : > { %2141 = vmatprep.mubr.f32.mxu1 %v2587_v11  ;;  %2222 = vmatprep.mubr.f32.mxu0 %v2598_v20 }
 0x10d   : > { %2142 = vmatmul.mubr.f32.vlgmr.msra.gmra.mrb[0].mxu1 %v2594_v16  ;;  %2223 = vmatmul.mubr.f32.gmra.mrb[2].mxu0 %v2606_v27 }
 0x10e   : > { %2144 = vmatprep.mubr.f32.mxu1 %v2602_v23  ;;  %2225 = vmatprep.mubr.f32.mxu0 %v2615_v34 }
 0x111   : > { %2145 = vmatmul.mubr.f32.gmra.mrb[2].mxu1 %v2611_v30  ;;  %2226 = vmatmul.mubr.f32.gmra.mrb[4].mxu0 %v2624_v41 }
 0x112   : > { %2147 = vmatprep.mubr.f32.mxu1 %v2620_v37  ;;  %2228 = vmatprep.mubr.f32.mxu0 %v2632_v48 }
 0x115   : > { %2148 = vmatmul.mubr.f32.gmra.mrb[4].mxu1 %v2628_v44  ;;  %2229 = vmatmul.mubr.f32.gmra.mrb[6].mxu0 %v2640_v55 }
 0x116   : > { %2150 = vmatprep.mubr.f32.mxu1 %v2636_v51  ;;  %2231 = vmatprep.mubr.f32.mxu0 %v2648_v62 }
 0x119   : > { %2151 = vmatmul.mubr.f32.gmra.mrb[6].mxu1 %v2644_v58  ;;  %2232 = vmatmul.mubr.f32.gmra.mrb[8].mxu0 %v2656_v7 }
 0x11a   : > { %2153 = vmatprep.mubr.f32.mxu1 %v2652_v1  ;;  %2234 = vmatprep.mubr.f32.mxu0 %v2664_v18 }
 0x11d   : > { %2154 = vmatmul.mubr.f32.gmra.mrb[8].mxu1 %v2660_v12  ;;  %2235 = vmatmul.mubr.f32.gmra.mrb[10].mxu0 %v2672_v28 }
 0x11e   : > { %2156 = vmatprep.mubr.f32.mxu1 %v2668_v22  ;;  %2237 = vmatprep.mubr.f32.mxu0 %v2680_v38 }
 0x121   : > { %2157 = vmatmul.mubr.f32.gmra.mrb[10].mxu1 %v2676_v32  ;;  %2238 = vmatmul.mubr.f32.gmra.mrb[12].mxu0 %v2688_v47 }
 0x122   : > { %2159 = vmatprep.mubr.f32.mxu1 %v2684_v42  ;;  %2240 = vmatprep.mubr.f32.mxu0 %v2696_v57 }
 0x125   : > { %2160 = vmatmul.mubr.f32.gmra.mrb[12].mxu1 %v2692_v52  ;;  %2241 = vmatmul.mubr.f32.gmra.mrb[14].mxu0 %v2704_v5 }
 0x126   : > { %2162 = vmatprep.mubr.f32.mxu1 %v2700_v61 }
 0x129   : > { %2163 = vmatmul.mubr.f32.gmra.mrb[14].mxu1 %v2708_v9 }
 0x1dc   : > { %v2221_v3 = vpop.f32.mrb[0].mxu0 }
 0x1dd   : > { %v1325_v4 = vpop.f32.mrb[1].mxu0 }
 0x1e0   : > { %v2143_v10 = vpop.f32.mrb[0].mxu1  ;;  %v2224_v11 = vpop.f32.mrb[2].mxu0 }
 0x1e1   : > { %v2779_v14 = vadd.f32 %v2221_v3, %v2143_v10  ;;  %v790_v16 = vpop.f32.mrb[1].mxu1  ;;  %v1337_v20 = vpop.f32.mrb[3].mxu0 }
 0x1e2   : > { %v2781_v23 = vadd.f32 %v1325_v4, %v790_v16 }
 0x1e3   : > { %1423 = vst [vmem:[#allocation2 + $0x8] sm:$0xff] (!%p1975_p12), %v2779_v14 }
 0x1e4   : > { %v2146_v27 = vpop.f32.mrb[2].mxu1  ;;  %v2227_v30 = vpop.f32.mrb[4].mxu0  ;;  %1422 = vst [vmem:[#allocation2] sm:$0xff] (!%p1975_p12), %v2781_v23 }
 0x1e5   : > { %v2783_v34 = vadd.f32 %v2224_v11, %v2146_v27  ;;  %v804_v37 = vpop.f32.mrb[3].mxu1  ;;  %v1349_v41 = vpop.f32.mrb[5].mxu0 }
 0x1e6   : > { %v2785_v44 = vadd.f32 %v1337_v20, %v804_v37 }
 0x1e7   : > { %1425 = vst [vmem:[#allocation2 + $0x18] sm:$0xff] (!%p1975_p12), %v2783_v34 }
 0x1e8   : > { %v2149_v48 = vpop.f32.mrb[4].mxu1  ;;  %v2230_v51 = vpop.f32.mrb[6].mxu0  ;;  %1424 = vst [vmem:[#allocation2 + $0x10] sm:$0xff] (!%p1975_p12), %v2785_v44 }
 0x1e9   : > { %v2787_v55 = vadd.f32 %v2227_v30, %v2149_v48  ;;  %v818_v58 = vpop.f32.mrb[5].mxu1  ;;  %v1361_v62 = vpop.f32.mrb[7].mxu0 }
 0x1ea   : > { %v2789_v1 = vadd.f32 %v1349_v41, %v818_v58 }
 0x1eb   : > { %1427 = vst [vmem:[#allocation2 + $0x28] sm:$0xff] (!%p1975_p12), %v2787_v55 }
 0x1ec   : > { %v2152_v7 = vpop.f32.mrb[6].mxu1  ;;  %v2233_v12 = vpop.f32.mrb[8].mxu0  ;;  %1426 = vst [vmem:[#allocation2 + $0x20] sm:$0xff] (!%p1975_p12), %v2789_v1 }
 0x1ed   : > { %v2791_v18 = vadd.f32 %v2230_v51, %v2152_v7  ;;  %v832_v22 = vpop.f32.mrb[7].mxu1  ;;  %v1373_v24 = vpop.f32.mrb[9].mxu0 }
 0x1ee   : > { %v2793_v25 = vadd.f32 %v1361_v62, %v832_v22 }
 0x1ef   : > { %1429 = vst [vmem:[#allocation2 + $0x38] sm:$0xff] (!%p1975_p12), %v2791_v18 }
 0x1f0   : > { %v2155_v26 = vpop.f32.mrb[8].mxu1  ;;  %v2236_v28 = vpop.f32.mrb[10].mxu0  ;;  %1428 = vst [vmem:[#allocation2 + $0x30] sm:$0xff] (!%p1975_p12), %v2793_v25 }
 0x1f1   : > { %v2795_v29 = vadd.f32 %v2233_v12, %v2155_v26  ;;  %v846_v31 = vpop.f32.mrb[9].mxu1  ;;  %v1385_v32 = vpop.f32.mrb[11].mxu0 }
 0x1f2   : > { %v2797_v33 = vadd.f32 %v1373_v24, %v846_v31 }
 0x1f3   : > { %1431 = vst [vmem:[#allocation2 + $0x48] sm:$0xff] (!%p1975_p12), %v2795_v29 }
 0x1f4   : > { %v2158_v35 = vpop.f32.mrb[10].mxu1  ;;  %v2239_v36 = vpop.f32.mrb[12].mxu0  ;;  %1430 = vst [vmem:[#allocation2 + $0x40] sm:$0xff] (!%p1975_p12), %v2797_v33 }
 0x1f5   : > { %v2799_v38 = vadd.f32 %v2236_v28, %v2158_v35  ;;  %v860_v39 = vpop.f32.mrb[11].mxu1  ;;  %v1397_v40 = vpop.f32.mrb[13].mxu0 }
 0x1f6   : > { %v2801_v42 = vadd.f32 %v1385_v32, %v860_v39 }
 0x1f7   : > { %1433 = vst [vmem:[#allocation2 + $0x58] sm:$0xff] (!%p1975_p12), %v2799_v38 }
 0x1f8   : > { %v2161_v43 = vpop.f32.mrb[12].mxu1  ;;  %v2242_v45 = vpop.f32.mrb[14].mxu0  ;;  %1421 = sbr.rel (%p1975_p12) target bundleno = 513 (0x201), region = 36  ;;  %1432 = vst [vmem:[#allocation2 + $0x50] sm:$0xff] (!%p1975_p12), %v2801_v42 }
 0x1f9   : > { %v2803_v46 = vadd.f32 %v2239_v36, %v2161_v43  ;;  %v874_v47 = vpop.f32.mrb[13].mxu1  ;;  %v1409_v49 = vpop.f32.mrb[15].mxu0 }
 0x1fa   : > { %v2805_v50 = vadd.f32 %v1397_v40, %v874_v47 }
 0x1fb   : > { %1435 = vst [vmem:[#allocation2 + $0x68] sm:$0xff] (!%p1975_p12), %v2803_v46 }
 0x1fc   : > { %v2164_v52 = vpop.f32.mrb[14].mxu1  ;;  %1434 = vst [vmem:[#allocation2 + $0x60] sm:$0xff] (!%p1975_p12), %v2805_v50 }
 0x1fd   : > { %v2807_v53 = vadd.f32 %v2242_v45, %v2164_v52  ;;  %v888_v54 = vpop.f32.mrb[15].mxu1 }
 0x1fe   : > { %v2809_v56 = vadd.f32 %v1409_v49, %v888_v54 }
 0x1ff   : > { %1437 = vst [vmem:[#allocation2 + $0x78] sm:$0xff] %v2807_v53 }
 0x200   : > { %1436 = vst [vmem:[#allocation2 + $0x70] sm:$0xff] %v2809_v56 }
 0x201 PF: > { %1441 = sbr.rel (%p238_p10) target bundleno = 524 (0x20c), region = 40  ;;  %v1442_v57 = vld [vmem:[#allocation2] sm:$0xff] (!%p238_p10)  ;;  %v1443_v59 = vld [vmem:[#allocation2 + $0x8] sm:$0xff] (!%p238_p10)  ;;  %v1444_v60 = vld [vmem:[#allocation2 + $0x10] sm:$0xff] (!%p238_p10) }
 0x202   : > { %v1458_v61 = vmin.f32 (!%p238_p10), %v1442_v57, %v2781_v23  ;;  %v1459_v63 = vmin.f32 (!%p238_p10), %v1443_v59, %v2779_v14  ;;  %v1460_v0 = vmin.f32 (!%p238_p10), %v1444_v60, %v2785_v44  ;;  %v1445_v2 = vld [vmem:[#allocation2 + $0x18] sm:$0xff] (!%p238_p10)  ;;  %v1446_v5 = vld [vmem:[#allocation2 + $0x20] sm:$0xff] (!%p238_p10)  ;;  %v1447_v6 = vld [vmem:[#allocation2 + $0x28] sm:$0xff] (!%p238_p10) }
 0x203   : > { %v1461_v8 = vmin.f32 (!%p238_p10), %v1445_v2, %v2783_v34  ;;  %v1462_v9 = vmin.f32 (!%p238_p10), %v1446_v5, %v2789_v1  ;;  %v1463_v13 = vmin.f32 (!%p238_p10), %v1447_v6, %v2787_v55  ;;  %v1448_v15 = vld [vmem:[#allocation2 + $0x30] sm:$0xff] (!%p238_p10)  ;;  %v1449_v17 = vld [vmem:[#allocation2 + $0x38] sm:$0xff] (!%p238_p10)  ;;  %v1450_v19 = vld [vmem:[#allocation2 + $0x40] sm:$0xff] (!%p238_p10) }
 0x204   : > { %1474 = vst [vmem:[#allocation2] sm:$0xff] (!%p238_p10), %v1458_v61  ;;  %1475 = vst [vmem:[#allocation2 + $0x8] sm:$0xff] (!%p238_p10), %v1459_v63  ;;  %v1464_v21 = vmin.f32 (!%p238_p10), %v1448_v15, %v2793_v25  ;;  %v1465_v3 = vmin.f32 (!%p238_p10), %v1449_v17, %v2791_v18  ;;  %v1466_v4 = vmin.f32 (!%p238_p10), %v1450_v19, %v2797_v33  ;;  %v1451_v10 = vld [vmem:[#allocation2 + $0x48] sm:$0xff] (!%p238_p10)  ;;  %v1452_v11 = vld [vmem:[#allocation2 + $0x50] sm:$0xff] (!%p238_p10) }
 0x205   : > { %1476 = vst [vmem:[#allocation2 + $0x10] sm:$0xff] (!%p238_p10), %v1460_v0  ;;  %v1453_v16 = vld [vmem:[#allocation2 + $0x58] sm:$0xff] (!%p238_p10)  ;;  %1477 = vst [vmem:[#allocation2 + $0x18] sm:$0xff] (!%p238_p10), %v1461_v8  ;;  %v1467_v20 = vmin.f32 (!%p238_p10), %v1451_v10, %v2795_v29  ;;  %v1468_v27 = vmin.f32 (!%p238_p10), %v1452_v11, %v2801_v42  ;;  %v1454_v37 = vld [vmem:[#allocation2 + $0x60] sm:$0xff] (!%p238_p10) }
 0x206   : > { %1478 = vst [vmem:[#allocation2 + $0x20] sm:$0xff] (!%p238_p10), %v1462_v9  ;;  %1479 = vst [vmem:[#allocation2 + $0x28] sm:$0xff] (!%p238_p10), %v1463_v13  ;;  %v1469_v30 = vmin.f32 (!%p238_p10), %v1453_v16, %v2799_v38  ;;  %v1455_v41 = vld [vmem:[#allocation2 + $0x68] sm:$0xff] (!%p238_p10)  ;;  %v1470_v51 = vmin.f32 (!%p238_p10), %v1454_v37, %v2805_v50 }
 0x207   : > { %v1456_v48 = vld [vmem:[#allocation2 + $0x70] sm:$0xff] (!%p238_p10)  ;;  %1480 = vst [vmem:[#allocation2 + $0x30] sm:$0xff] (!%p238_p10), %v1464_v21  ;;  %1481 = vst [vmem:[#allocation2 + $0x38] sm:$0xff] (!%p238_p10), %v1465_v3  ;;  %v1471_v58 = vmin.f32 (!%p238_p10), %v1455_v41, %v2803_v46 }
 0x208   : > { %1482 = vst [vmem:[#allocation2 + $0x40] sm:$0xff] %v1466_v4  ;;  %v1472_v62 = vmin.f32 %v1456_v48, %v2809_v56  ;;  %v1457_v7 = vld [vmem:[#allocation2 + $0x78] sm:$0xff]  ;;  %1483 = vst [vmem:[#allocation2 + $0x48] sm:$0xff] %v1467_v20 }
 0x209   : > { %1484 = vst [vmem:[#allocation2 + $0x50] sm:$0xff] %v1468_v27  ;;  %1485 = vst [vmem:[#allocation2 + $0x58] sm:$0xff] %v1469_v30  ;;  %v1473_v12 = vmin.f32 %v1457_v7, %v2807_v53 }
 0x20a   : > { %1486 = vst [vmem:[#allocation2 + $0x60] sm:$0xff] %v1470_v51  ;;  %1487 = vst [vmem:[#allocation2 + $0x68] sm:$0xff] %v1471_v58 }
 0x20b   : > { %1488 = vst [vmem:[#allocation2 + $0x70] sm:$0xff] %v1472_v62  ;;  %1489 = vst [vmem:[#allocation2 + $0x78] sm:$0xff] %v1473_v12 }
 0x20c PF: > { %v1490_v22 = vmin.f32 %v2781_v23, %v2789_v1  ;;  %v1491_v24 = vmin.f32 %v2779_v14, %v2787_v55  ;;  %v1492_v26 = vmin.f32 %v2785_v44, %v2793_v25  ;;  %v1493_v28 = vmin.f32 %v2783_v34, %v2791_v18  ;;  %p1977_p13 = scmp.ne.s32.totalorder %s2455_s13, 0 }
 0x20d   : > { %s1514_s14 = scalar_lea.vmem (!%p1977_p13), [#allocation3], %s2451_s12 }
 0x20e   : > { %v1494_v31 = vmin.f32 %v1490_v22, %v2797_v33  ;;  %v1495_v32 = vmin.f32 %v1491_v24, %v2795_v29  ;;  %v1496_v35 = vmin.f32 %v1492_v26, %v2801_v42  ;;  %v1497_v36 = vmin.f32 %v1493_v28, %v2799_v38 }
 0x210   : > { %v1498_v39 = vmin.f32 %v1494_v31, %v2805_v50  ;;  %v1499_v23 = vmin.f32 %v1495_v32, %v2803_v46  ;;  %v1500_v14 = vmin.f32 %v1496_v35, %v2809_v56  ;;  %v1501_v55 = vmin.f32 %v1497_v36, %v2807_v53 }
 0x212   : > { %v1502_v44 = vmin.f32 %v1498_v39, %v1499_v23  ;;  %v1503_v1 = vmin.f32 %v1500_v14, %v1501_v55 }
 0x214   : > { %v1504_v25 = vmin.f32 %v1502_v44, %v1503_v1 }
 0x216   : > { %v1505_v34 = vrot.slane %v1504_v25, 4 }
 0x218   : > { %v1506_v18 = vmin.f32 %v1504_v25, %v1505_v34 }
 0x21a   : > { %v1507_v33 = vrot.slane %v1506_v18, 2  ;;  %1513 = sbr.rel (%p1977_p13) target bundleno = 547 (0x223), region = 44 }
 0x21c   : > { %v1508_v40 = vmin.f32 %v1506_v18, %v1507_v33 }
 0x21e   : > { %v1509_v29 = vrot.slane %v1508_v40, 1 }
 0x220   : > { %v1510_v43 = vmin.f32 %v1508_v40, %v1509_v29 }
 0x222   : > { %1515 = vst [vmem:[%s1514_s14] sm:$0x1] %v1510_v43 }
 0x223 PF: > { %1519 = sbr.rel (%p237_p9) target bundleno = 557 (0x22d), region = 48  ;;  %s1520_s21 = scalar_lea.vmem (!%p237_p9), [#allocation3], %s2451_s12 }
 0x229   : > { %v1521_v38 = vld [vmem:[%s1520_s21] sm:$0x1] (!%p237_p9) }
 0x22a   : > { %v1522_v42 = vmin.f32 %v1521_v38, %v1510_v43 }
 0x22c   : > { %1523 = vst [vmem:[%s1520_s21] sm:$0x1] %v1522_v42 }
 0x22d PF: > { %p1979_p0 = scmp.ne.s32.totalorder %s2451_s12, 4 }
 0x22e   : > { %v1530_v45 = vld [vmem:[#allocation2 + $0x10] sm:$0xff] (!%p1979_p0)  ;;  %v1528_v46 = vld [vmem:[#allocation2] sm:$0xff] (!%p1979_p0)  ;;  %v1531_v47 = vld [vmem:[#allocation2 + $0x18] sm:$0xff] (!%p1979_p0)  ;;  %v1705_v5 = vlaneseq (!%p1979_p0)  ;;  %s1980_s22 = sshll.u32 (!%p1979_p0), %s2455_s13, 7  ;;  %vm1772_vm4 = vcmask (!%p1979_p0), 7168  }
 0x22f   : > { %1527 = sbr.rel (%p1979_p0) target bundleno = 969 (0x3c9), region = 52  ;;  %1548 = vmin.xlane.f32.xlu1 (!%p1979_p0), %v1530_v45  ;;  %1544 = vmin.xlane.f32.xlu0 (!%p1979_p0), %v1528_v46  ;;  %v1529_v49 = vld [vmem:[#allocation2 + $0x8] sm:$0xff] (!%p1979_p0)  ;;  %v1532_v52 = vld [vmem:[#allocation2 + $0x20] sm:$0xff] (!%p1979_p0)  ;;  %v1535_v53 = vld [vmem:[#allocation2 + $0x38] sm:$0xff] (!%p1979_p0)  ;;  %v1722_v3 = vstv (!%p1979_p0), %s1980_s22 }
 0x230   : > { %v1533_v50 = vld [vmem:[#allocation2 + $0x28] sm:$0xff] (!%p1979_p0)  ;;  %v1534_v54 = vld [vmem:[#allocation2 + $0x30] sm:$0xff] (!%p1979_p0)  ;;  %v1536_v57 = vld [vmem:[#allocation2 + $0x40] sm:$0xff] (!%p1979_p0)  ;;  %v1706_v6 = vshrl.u32 (!%p1979_p0), %v1705_v5, 7 }
 0x231   : > { %v1537_v56 = vld [vmem:[#allocation2 + $0x48] sm:$0xff] (!%p1979_p0)  ;;  %v1539_v59 = vld [vmem:[#allocation2 + $0x58] sm:$0xff] (!%p1979_p0)  ;;  %v1538_v60 = vld [vmem:[#allocation2 + $0x50] sm:$0xff] (!%p1979_p0) }
 0x232   : > { %v1541_v61 = vld [vmem:[#allocation2 + $0x68] sm:$0xff] (!%p1979_p0)  ;;  %v1540_v63 = vld [vmem:[#allocation2 + $0x60] sm:$0xff] (!%p1979_p0)  ;;  %v1543_v0 = vld [vmem:[#allocation2 + $0x78] sm:$0xff] (!%p1979_p0)  ;;  %v1708_v17 = vadd.s32 (!%p1979_p0), 16, %v1706_v6  ;;  %v1707_v4 = vadd.s32 (!%p1979_p0), 8, %v1706_v6  ;;  %v1709_v16 = vadd.s32 (!%p1979_p0), 24, %v1706_v6  ;;  %v2882_v37 = vadd.s32 (!%p1979_p0), %v1722_v3, %v1706_v6 }
 0x233   : > { %1550 = vmin.xlane.f32.xlu1 (!%p1979_p0), %v1531_v47  ;;  %1546 = vmin.xlane.f32.xlu0 (!%p1979_p0), %v1529_v49  ;;  %v1542_v2 = vld [vmem:[#allocation2 + $0x70] sm:$0xff] (!%p1979_p0)  ;;  %v1711_v48 = vadd.s32 (!%p1979_p0), 40, %v1706_v6  ;;  %v1710_v58 = vadd.s32 (!%p1979_p0), 32, %v1706_v6  ;;  %v1712_v62 = vadd.s32 (!%p1979_p0), 48, %v1706_v6  ;;  %v1713_v7 = vadd.s32 (!%p1979_p0), 56, %v1706_v6 }
 0x234   : > { %v2879_v20 = vadd.s32 (!%p1979_p0), %v1722_v3, %v1708_v17  ;;  %v2884_v41 = vadd.s32 (!%p1979_p0), %v1722_v3, %v1707_v4  ;;  %v2889_v12 = vadd.s32 (!%p1979_p0), %v1722_v3, %v1709_v16  ;;  %v1714_v24 = vadd.s32 (!%p1979_p0), 64, %v1706_v6 }
 0x235   : > { %v1715_v26 = vadd.s32 (!%p1979_p0), 72, %v1706_v6  ;;  %v1716_v32 = vadd.s32 (!%p1979_p0), 80, %v1706_v6  ;;  %v1717_v35 = vadd.s32 (!%p1979_p0), 88, %v1706_v6  ;;  %v1718_v36 = vadd.s32 (!%p1979_p0), 96, %v1706_v6 }
 0x236   : > { %vm1740_vm1 = vcmp.lt.s32.totalorder %v2884_v41, 300  ;;  %v1719_v23 = vadd.s32 104, %v1706_v6  ;;  %v1720_v14 = vadd.s32 112, %v1706_v6  ;;  %v1721_v55 = vadd.s32 120, %v1706_v6 }
 0x237   : > { %1554 = vmin.xlane.f32.xlu1 %v1533_v50  ;;  %1552 = vmin.xlane.f32.xlu0 %v1532_v52  ;;  %v2897_v1 = vadd.s32 %v1722_v3, %v1711_v48  ;;  %v2899_v25 = vadd.s32 %v1722_v3, %v1710_v58  ;;  %v2901_v34 = vadd.s32 %v1722_v3, %v1712_v62  ;;  %vm1739_vm2 = vcmp.lt.s32.totalorder %v2882_v37, 300 }
 0x238   : > { %v2903_v18 = vadd.s32 %v1722_v3, %v1713_v7  ;;  %v2909_v29 = vadd.s32 %v1722_v3, %v1714_v24  ;;  %v2911_v43 = vadd.s32 %v1722_v3, %v1715_v26  ;;  %v2914_v46 = vadd.s32 %v1722_v3, %v1716_v32 }
 0x239   : > { %v2916_v47 = vadd.s32 %v1722_v3, %v1717_v35  ;;  %v2918_v49 = vadd.s32 %v1722_v3, %v1718_v36  ;;  %vm1741_vm3 = vcmp.lt.s32.totalorder %v2879_v20, 300  ;;  %v2922_v50 = vadd.s32 %v1722_v3, %v1719_v23 }
 0x23a   : > { %v2924_v52 = vadd.s32 %v1722_v3, %v1720_v14  ;;  %vm1742_vm11 = vcmp.lt.s32.totalorder %v2889_v12, 300  ;;  %vm1743_vm15 = vcmp.lt.s32.totalorder %v2899_v25, 300 }
 0x23b   : > { %1558 = vmin.xlane.f32.xlu1 %v1535_v53  ;;  %1556 = vmin.xlane.f32.xlu0 %v1534_v54  ;;  %v2926_v53 = vadd.s32 %v1722_v3, %v1721_v55 }
 0x23f   : > { %1562 = vmin.xlane.f32.xlu1 %v1537_v56  ;;  %1560 = vmin.xlane.f32.xlu0 %v1536_v57 }
 0x243   : > { %1566 = vmin.xlane.f32.xlu1 %v1539_v59  ;;  %1564 = vmin.xlane.f32.xlu0 %v1538_v60 }
 0x247   : > { %1570 = vmin.xlane.f32.xlu1 %v1541_v61  ;;  %1568 = vmin.xlane.f32.xlu0 %v1540_v63 }
 0x24b   : > { %1574 = vmin.xlane.f32.xlu1 %v1543_v0  ;;  %1572 = vmin.xlane.f32.xlu0 %v1542_v2 }
 0x2bc   : > { %v1549_v8 = vpop.xlane.xlu1 %1548  ;;  %v1545_v9 = vpop.xlane.xlu0 %1544 }
 0x2bd   : > { %v2868_v13 = vmax.f32 %v1549_v8, 0.0  ;;  %v2870_v15 = vmax.f32 %v1545_v9, 0.0 }
 0x2bf   : > { %2387 = vrsqrt.f32 %v2870_v15  ;;  %vm1608_vm5 = vcmp.eq.f32.partialorder %v2868_v13, inf  ;;  %vm1610_vm6 = vcmp.eq.f32.partialorder %v2868_v13, 0.0  ;;  %vm1594_vm7 = vcmp.eq.f32.partialorder %v2870_v15, inf }
 0x2c0   : > { %v1551_v19 = vpop.xlane.xlu1 %1550  ;;  %v1547_v21 = vpop.xlane.xlu0 %1546  ;;  %2389 = vrsqrt.f32 %v2868_v13  ;;  %v1611_v63 = vand.u32 2147483648, %v2868_v13  ;;  %vm1596_vm9 = vcmp.eq.f32.partialorder %v2870_v15, 0.0  ;;  %v1597_v8 = vand.u32 2147483648, %v2870_v15 }
 0x2c1   : > { %v2875_v10 = vmax.f32 %v1547_v21, 0.0  ;;  %v2877_v11 = vmax.f32 %v1551_v19, 0.0 }
 0x2c3   : > { %2391 = vrsqrt.f32 %v2875_v10  ;;  %vm1601_vm8 = vcmp.eq.f32.partialorder %v2875_v10, inf  ;;  %v1604_v2 = vand.u32 2147483648, %v2875_v10  ;;  %vm1603_vm10 = vcmp.eq.f32.partialorder %v2875_v10, 0.0 }
 0x2c4   : > { %v1555_v27 = vpop.xlane.xlu1 %1554  ;;  %v1553_v30 = vpop.xlane.xlu0 %1552  ;;  %2393 = vrsqrt.f32 %v2877_v11  ;;  %vm1615_vm12 = vcmp.eq.f32.partialorder %v2877_v11, inf  ;;  %vm1617_vm13 = vcmp.eq.f32.partialorder %v2877_v11, 0.0 }
 0x2c5   : > { %v2886_v51 = vmax.f32 %v1553_v30, 0.0  ;;  %v2891_v22 = vmax.f32 %v1555_v27, 0.0 }
 0x2c7   : > { %2395 = vrsqrt.f32 %v2886_v51  ;;  %vm1629_vm14 = vcmp.eq.f32.partialorder %v2891_v22, inf  ;;  %v1632_v16 = vand.u32 2147483648, %v2891_v22  ;;  %vm1622_vm0 = vcmp.eq.f32.partialorder %v2886_v51, inf }
 0x2c8   : > { %v1559_v28 = vpop.xlane.xlu1 %1558  ;;  %v1557_v31 = vpop.xlane.xlu0 %1556  ;;  %2397 = vrsqrt.f32 %v2891_v22  ;;  %v1625_v24 = vand.u32 2147483648, %v2886_v51 }
 0x2c9   : > { %v2895_v39 = vmax.f32 %v1557_v31, 0.0  ;;  %v2388_v44 = vpop.eup %2387  ;;  %v2907_v40 = vmax.f32 %v1559_v28, 0.0 }
 0x2ca   : > { %v2390_v33 = vpop.eup %2389  ;;  %v1593_v38 = vmul.f32 %v2388_v44, %v2870_v15 }
 0x2cb   : > { %2399 = vrsqrt.f32 %v2895_v39  ;;  %v1607_v56 = vmul.f32 %v2390_v33, %v2868_v13  ;;  %v1646_v35 = vand.u32 2147483648, %v2907_v40 }
 0x2cc   : > { %v1563_v42 = vpop.xlane.xlu1 %1562  ;;  %v1561_v45 = vpop.xlane.xlu0 %1560  ;;  %2401 = vrsqrt.f32 %v2907_v40  ;;  %v1595_v0 = vsel %vm1594_vm7, %v2870_v15, %v1593_v38  ;;  %v1618_v15 = vand.u32 2147483648, %v2877_v11  ;;  %vm1643_vm7 = vcmp.eq.f32.partialorder %v2907_v40, inf }
 0x2cd   : > { %v2392_v54 = vpop.eup %2391  ;;  %v2934_v59 = vmax.f32 %v1563_v42, 0.0  ;;  %v2936_v60 = vmax.f32 %v1561_v45, 0.0  ;;  %v1609_v19 = vsel %vm1608_vm5, %v2868_v13, %v1607_v56  ;;  %v1598_v3 = vsel %vm1596_vm9, %v1597_v8, %v1595_v0 }
 0x2ce   : > { %v1600_v57 = vmul.f32 %v2392_v54, %v2875_v10  ;;  %v2394_v61 = vpop.eup %2393  ;;  %v1612_v58 = vsel %vm1610_vm6, %v1611_v63, %v1609_v19  ;;  %v1755_v41 = vsel %vm1739_vm2, %v1598_v3, 0.0  ;;  %vm1624_vm5 = vcmp.eq.f32.partialorder %v2886_v51, 0.0 }
 0x2cf   : > { %2403 = vrsqrt.f32 %v2936_v60  ;;  %v1614_v4 = vmul.f32 %v2394_v61, %v2877_v11  ;;  %vm1744_vm6 = vcmp.lt.s32.totalorder %v2897_v1, 300  ;;  %v1757_v37 = vsel %vm1741_vm3, %v1612_v58, 0.0 }
 0x2d0   : > { %v1567_v5 = vpop.xlane.xlu1 %1566  ;;  %v1565_v6 = vpop.xlane.xlu0 %1564  ;;  %v1602_v9 = vsel %vm1601_vm8, %v2875_v10, %v1600_v57  ;;  %2405 = vrsqrt.f32 %v2934_v59  ;;  %v1773_v55 = vsel %vm1772_vm4, %v1755_v41, 0.0  ;;  %vm1745_vm2 = vcmp.lt.s32.totalorder %v2901_v34, 300 }
 0x2d1   : > { %v2396_v17 = vpop.eup %2395  ;;  %v1605_v21 = vsel %vm1603_vm10, %v1604_v2, %v1602_v9  ;;  %v2965_v7 = vmax.f32 %v1567_v5, 0.0  ;;  %v2972_v26 = vmax.f32 %v1565_v6, 0.0  ;;  %v1616_v13 = vsel %vm1615_vm12, %v2877_v11, %v1614_v4 }
 0x2d2   : > { %v1756_v10 = vsel %vm1740_vm1, %v1605_v21, 0.0  ;;  %v2398_v48 = vpop.eup %2397  ;;  %v1621_v62 = vmul.f32 %v2396_v17, %v2886_v51  ;;  %vm1631_vm1 = vcmp.eq.f32.partialorder %v2891_v22, 0.0  ;;  %v1619_v20 = vsel %vm1617_vm13, %v1618_v15, %v1616_v13 }
 0x2d3   : > { %v1774_v31 = vsel %vm1772_vm4, %v1756_v10, 0.0  ;;  %2407 = vrsqrt.f32 %v2965_v7  ;;  %v1628_v32 = vmul.f32 %v2398_v48, %v2891_v22  ;;  %vm1645_vm3 = vcmp.eq.f32.partialorder %v2907_v40, 0.0 }
 0x2d4   : > { %v1571_v27 = vpop.xlane.xlu1 %1570  ;;  %v1569_v30 = vpop.xlane.xlu0 %1568  ;;  %2409 = vrsqrt.f32 %v2972_v26  ;;  %v1623_v44 = vsel %vm1622_vm0, %v2886_v51, %v1621_v62  ;;  %v1775_v42 = vadd.f32 %v1774_v31, %v1773_v55  ;;  %vm1636_vm8 = vcmp.eq.f32.partialorder %v2895_v39, inf }
 0x2d5   : > { %v2400_v28 = vpop.eup %2399  ;;  %v2990_v33 = vmax.f32 %v1571_v27, 0.0  ;;  %v2992_v38 = vmax.f32 %v1569_v30, 0.0  ;;  %vm1638_vm9 = vcmp.eq.f32.partialorder %v2895_v39, 0.0  ;;  %vm1746_vm10 = vcmp.lt.s32.totalorder %v2903_v18, 300 }
 0x2d6   : > { %v2402_v14 = vpop.eup %2401  ;;  %v1635_v45 = vmul.f32 %v2400_v28, %v2895_v39  ;;  %v1630_v11 = vsel %vm1629_vm14, %v2891_v22, %v1628_v32  ;;  %v1626_v61 = vsel %vm1624_vm5, %v1625_v24, %v1623_v44  ;;  %v1776_v2 = vsel %vm1772_vm4, %v1757_v37, 0.0 }
 0x2d7   : > { %2411 = vrsqrt.f32 %v2990_v33  ;;  %v1642_v63 = vmul.f32 %v2402_v14, %v2907_v40  ;;  %v1758_v5 = vsel %vm1742_vm11, %v1619_v20, 0.0  ;;  %v1639_v6 = vand.u32 2147483648, %v2895_v39 }
 0x2d8   : > { %v1575_v36 = vpop.xlane.xlu1 %1574  ;;  %v1573_v23 = vpop.xlane.xlu0 %1572  ;;  %2413 = vrsqrt.f32 %v2992_v38  ;;  %vm1657_vm12 = vcmp.eq.f32.partialorder %v2934_v59, inf  ;;  %vm1747_vm13 = vcmp.lt.s32.totalorder %v2909_v29, 300  ;;  %v1777_v8 = vadd.f32 %v1776_v2, %v1775_v42 }
 0x2d9   : > { %v2999_v54 = vmax.f32 %v1573_v23, 0.0  ;;  %v3004_v56 = vmax.f32 %v1575_v36, 0.0  ;;  %v2404_v57 = vpop.eup %2403  ;;  %v1637_v51 = vsel %vm1636_vm8, %v2895_v39, %v1635_v45  ;;  %v1633_v17 = vsel %vm1631_vm1, %v1632_v16, %v1630_v11 }
 0x2da   : > { %v2406_v0 = vpop.eup %2405  ;;  %v1649_v9 = vmul.f32 %v2404_v57, %v2936_v60  ;;  %v1759_v12 = vsel %vm1743_vm15, %v1626_v61, 0.0  ;;  %vm1659_vm11 = vcmp.eq.f32.partialorder %v2934_v59, 0.0  ;;  %vm1748_vm14 = vcmp.lt.s32.totalorder %v2911_v43, 300 }
 0x2db   : > { %2415 = vrsqrt.f32 %v2999_v54  ;;  %v1778_v19 = vsel %vm1772_vm4, %v1758_v5, 0.0  ;;  %v1644_v21 = vsel %vm1643_vm7, %v2907_v40, %v1642_v63  ;;  %v1656_v3 = vmul.f32 %v2406_v0, %v2934_v59 }
 0x2dc   : > { %2417 = vrsqrt.f32 %v3004_v56  ;;  %v1660_v22 = vand.u32 2147483648, %v2934_v59  ;;  %v1640_v25 = vsel %vm1638_vm9, %v1639_v6, %v1637_v51  ;;  %vm1650_vm15 = vcmp.eq.f32.partialorder %v2936_v60, inf }
 0x2dd   : > { %v2408_v4 = vpop.eup %2407  ;;  %vm1652_vm0 = vcmp.eq.f32.partialorder %v2936_v60, 0.0  ;;  %v1653_v15 = vand.u32 2147483648, %v2936_v60  ;;  %vm1749_vm1 = vcmp.lt.s32.totalorder %v2914_v46, 300  ;;  %v1760_v16 = vsel %vm1744_vm6, %v1633_v17, 0.0 }
 0x2de   : > { %v2410_v10 = vpop.eup %2409  ;;  %v1780_v27 = vsel %vm1772_vm4, %v1759_v12, 0.0  ;;  %v1651_v30 = vsel %vm1650_vm15, %v2936_v60, %v1649_v9  ;;  %v1779_v48 = vadd.f32 %v1778_v19, %v1777_v8  ;;  %vm1664_vm5 = vcmp.eq.f32.partialorder %v2972_v26, inf }
 0x2df   : > { %v1663_v39 = vmul.f32 %v2410_v10, %v2972_v26  ;;  %v1667_v58 = vand.u32 2147483648, %v2972_v26  ;;  %v1647_v62 = vsel %vm1645_vm3, %v1646_v35, %v1644_v21  ;;  %vm1750_vm7 = vcmp.lt.s32.totalorder %v2916_v47, 300 }
 0x2e0   : > { %v1658_v1 = vsel %vm1657_vm12, %v2934_v59, %v1656_v3  ;;  %v1670_v41 = vmul.f32 %v2408_v4, %v2965_v7  ;;  %v1761_v24 = vsel %vm1745_vm2, %v1640_v25, 0.0  ;;  %v1781_v28 = vadd.f32 %v1780_v27, %v1779_v48 }
 0x2e1   : > { %v2412_v13 = vpop.eup %2411  ;;  %v1654_v31 = vsel %vm1652_vm0, %v1653_v15, %v1651_v30  ;;  %vm1666_vm6 = vcmp.eq.f32.partialorder %v2972_v26, 0.0  ;;  %vm1671_vm3 = vcmp.eq.f32.partialorder %v2965_v7, inf  ;;  %vm1751_vm8 = vcmp.lt.s32.totalorder %v2918_v49, 300 }
 0x2e2   : > { %v1782_v40 = vsel %vm1772_vm4, %v1760_v16, 0.0  ;;  %v2414_v37 = vpop.eup %2413  ;;  %v1665_v32 = vsel %vm1664_vm5, %v2972_v26, %v1663_v39  ;;  %vm1673_vm9 = vcmp.eq.f32.partialorder %v2965_v7, 0.0  ;;  %v1762_v34 = vsel %vm1746_vm10, %v1647_v62, 0.0 }
 0x2e3   : > { %v1783_v35 = vadd.f32 %v1782_v40, %v1781_v28  ;;  %v1661_v60 = vsel %vm1659_vm11, %v1660_v22, %v1658_v1  ;;  %v1674_v36 = vand.u32 2147483648, %v2965_v7  ;;  %v1677_v23 = vmul.f32 %v2414_v37, %v2992_v38 }
 0x2e4   : > { %vm1752_vm2 = vcmp.lt.s32.totalorder %v2922_v50, 300  ;;  %v1784_v14 = vsel %vm1772_vm4, %v1761_v24, 0.0  ;;  %v1672_v44 = vsel %vm1671_vm3, %v2965_v7, %v1670_v41  ;;  %v1684_v20 = vmul.f32 %v2412_v13, %v2990_v33 }
 0x2e5   : > { %v2416_v55 = vpop.eup %2415  ;;  %v1763_v18 = vsel %vm1747_vm13, %v1654_v31, 0.0  ;;  %v1785_v42 = vadd.f32 %v1784_v14, %v1783_v35  ;;  %v1668_v59 = vsel %vm1666_vm6, %v1667_v58, %v1665_v32  ;;  %vm1678_vm10 = vcmp.eq.f32.partialorder %v2992_v38, inf  ;;  %v1771_v31 = vld [vmem:[%s2551_s26] sm:$0x1] }
 0x2e6   : > { %v2418_v45 = vpop.eup %2417  ;;  %vm1680_vm12 = vcmp.eq.f32.partialorder %v2992_v38, 0.0  ;;  %v1786_v57 = vsel %vm1772_vm4, %v1762_v34, 0.0  ;;  %v1679_v11 = vsel %vm1678_vm10, %v2992_v38, %v1677_v23  ;;  %v1691_v61 = vmul.f32 %v2416_v55, %v2999_v54 }
 0x2e7   : > { %v1764_v63 = vsel %vm1748_vm14, %v1661_v60, 0.0  ;;  %v1787_v29 = vadd.f32 %v1786_v57, %v1785_v42  ;;  %v1675_v0 = vsel %vm1673_vm9, %v1674_v36, %v1672_v44  ;;  %v1681_v26 = vand.u32 2147483648, %v2992_v38 }
 0x2e8   : > { %vm1685_vm13 = vcmp.eq.f32.partialorder %v2990_v33, inf  ;;  %v1788_v2 = vsel %vm1772_vm4, %v1763_v18, 0.0  ;;  %v1698_v6 = vmul.f32 %v2418_v45, %v3004_v56  ;;  %v1765_v8 = vsel %vm1749_vm1, %v1668_v59, 0.0 }
 0x2e9   : > { %v1686_v5 = vsel %vm1685_vm13, %v2990_v33, %v1684_v20  ;;  %v1789_v51 = vadd.f32 %v1788_v2, %v1787_v29  ;;  %v1682_v43 = vsel %vm1680_vm12, %v1681_v26, %v1679_v11  ;;  %v1688_v9 = vand.u32 2147483648, %v2990_v33 }
 0x2ea   : > { %vm1692_vm11 = vcmp.eq.f32.partialorder %v2999_v54, inf  ;;  %v1790_v7 = vsel %vm1772_vm4, %v1764_v63, 0.0  ;;  %vm1687_vm14 = vcmp.eq.f32.partialorder %v2990_v33, 0.0  ;;  %v1766_v17 = vsel %vm1750_vm7, %v1675_v0, 0.0 }
 0x2eb   : > { %v1693_v38 = vsel %vm1692_vm11, %v2999_v54, %v1691_v61  ;;  %v1791_v12 = vadd.f32 %v1790_v7, %v1789_v51  ;;  %v1689_v19 = vsel %vm1687_vm14, %v1688_v9, %v1686_v5  ;;  %v1695_v46 = vand.u32 2147483648, %v2999_v54 }
 0x2ec   : > { %vm1699_vm15 = vcmp.eq.f32.partialorder %v3004_v56, inf  ;;  %v1792_v21 = vsel %vm1772_vm4, %v1765_v8, 0.0  ;;  %vm1694_vm0 = vcmp.eq.f32.partialorder %v2999_v54, 0.0  ;;  %v1767_v33 = vsel %vm1751_vm8, %v1682_v43, 0.0 }
 0x2ed   : > { %v1700_v3 = vsel %vm1699_vm15, %v3004_v56, %v1698_v6  ;;  %v1793_v22 = vadd.f32 %v1792_v21, %v1791_v12  ;;  %v1696_v4 = vsel %vm1694_vm0, %v1695_v46, %v1693_v38  ;;  %v1702_v47 = vand.u32 2147483648, %v3004_v56 }
 0x2ee   : > { %vm1753_vm1 = vcmp.lt.s32.totalorder %v2924_v52, 300  ;;  %v1794_v25 = vsel %vm1772_vm4, %v1766_v17, 0.0  ;;  %vm1701_vm5 = vcmp.eq.f32.partialorder %v3004_v56, 0.0  ;;  %v1768_v15 = vsel %vm1752_vm2, %v1689_v19, 0.0 }
 0x2ef   : > { %v1795_v10 = vadd.f32 %v1794_v25, %v1793_v22  ;;  %v1703_v54 = vsel %vm1701_vm5, %v1702_v47, %v1700_v3  ;;  %vm1754_vm7 = vcmp.lt.s32.totalorder %v2926_v53, 300  ;;  %v1796_v49 = vsel %vm1772_vm4, %v1767_v33, 0.0 }
 0x2f0   : > { %v1769_v16 = vsel %vm1753_vm1, %v1696_v4, 0.0  ;;  %v1798_v30 = vsel %vm1772_vm4, %v1768_v15, 0.0  ;;  %v1770_v48 = vsel %vm1754_vm7, %v1703_v54, 0.0 }
 0x2f1   : > { %v1797_v27 = vadd.f32 %v1796_v49, %v1795_v10  ;;  %v1800_v39 = vsel %vm1772_vm4, %v1769_v16, 0.0  ;;  %v1802_v50 = vsel %vm1772_vm4, %v1770_v48, 0.0 }
 0x2f3   : > { %v1799_v52 = vadd.f32 %v1798_v30, %v1797_v27 }
 0x2f5   : > { %v1801_v58 = vadd.f32 %v1800_v39, %v1799_v52 }
 0x2f7   : > { %v1803_v56 = vadd.f32 %v1802_v50, %v1801_v58 }
 0x2f9   : > { %1804 = vadd.xlane.f32.xlu0 %v1803_v56 }
 0x386   : > { %v1805_v62 = vpop.xlane.xlu0 %1804 }
 0x387   : > { %v1806_v1 = vrot.slane %v1805_v62, 4 }
 0x389   : > { %v1807_v53 = vadd.f32 %v1806_v1, %v1805_v62 }
 0x38b   : > { %v1808_v41 = vrot.slane %v1807_v53, 2 }
 0x38d   : > { %v1809_v24 = vadd.f32 %v1808_v41, %v1807_v53 }
 0x38f   : > { %v1810_v28 = vrot.slane %v1809_v24, 1 }
 0x391   : > { %v1811_v13 = vadd.f32 %v1810_v28, %v1809_v24 }
 0x393   : > { %2325 = vpush %v1811_v13 }
 0x3c4   : > { %s2326_s23 = spop %2325 }
 0x3c5   : > { %v1813_v40 = vstv %s2326_s23 }
 0x3c6   : > { %v1814_v37 = vadd.f32 %v1813_v40, %v1771_v31 }
 0x3c8   : > { %1815 = vst [vmem:[%s2551_s26] sm:$0x1] %v1814_v37 }
 0x3c9 PF: > { %p1981_p1 = scmp.ne.s32.totalorder %s2455_s13, 2 }
 0x3ca   : > { %s1820_s27 = scalar_lea.vmem (!%p1981_p1), [#allocation3], %s2451_s12  ;;  %v1831_v35 = vlaneseq (!%p1981_p1)  ;;  %s1982_s28 = sshll.u32 (!%p1981_p1), %s2451_s12, 7  ;;  %vm1838_vm8 = vcmask (!%p1981_p1), 1040384   ;;  %v1837_v26 = vld [vmem:[%s2557_s6] sm:$0x1] (!%p1981_p1) }
 0x3cb   : > { %1819 = sbr.rel (%p1981_p1) target bundleno = 1199 (0x4af), region = 56  ;;  %v1821_v32 = vld [vmem:[%s1820_s27] sm:$0x1] (!%p1981_p1)  ;;  %v1833_v36 = vstv (!%p1981_p1), %s1982_s28 }
 0x3cc   : > { %v1822_v34 = vmax.f32 (!%p1981_p1), %v1821_v32, 0.0  ;;  %v1832_v60 = vand.u32 (!%p1981_p1), 127, %v1831_v35 }
 0x3ce   : > { %2419 = vrsqrt.f32 (!%p1981_p1), %v1822_v34  ;;  %v1834_v23 = vadd.s32 (!%p1981_p1), %v1833_v36, %v1832_v60  ;;  %vm1825_vm4 = vcmp.eq.f32.partialorder (!%p1981_p1), %v1822_v34, inf  ;;  %v1828_v55 = vand.u32 (!%p1981_p1), 2147483648, %v1822_v34 }
 0x3cf   : > { %vm1827_vm6 = vcmp.eq.f32.partialorder (!%p1981_p1), %v1822_v34, 0.0 }
 0x3d0   : > { %vm1835_vm3 = vcmp.lt.s32.totalorder (!%p1981_p1), %v1834_v23, 520 }
 0x3d8   : > { %v2420_v14 = vpop.eup %2419 }
 0x3d9   : > { %v1824_v44 = vmul.f32 %v2420_v14, %v1822_v34 }
 0x3db   : > { %v1826_v20 = vsel %vm1825_vm4, %v1822_v34, %v1824_v44 }
 0x3dc   : > { %v1829_v18 = vsel %vm1827_vm6, %v1828_v55, %v1826_v20 }
 0x3dd   : > { %v1836_v42 = vsel %vm1835_vm3, %v1829_v18, 0.0 }
 0x3de   : > { %v1839_v45 = vsel %vm1838_vm8, %v1836_v42, 0.0 }
 0x3df   : > { %1840 = vadd.xlane.f32.xlu0 %v1839_v45 }
 0x46c   : > { %v1841_v59 = vpop.xlane.xlu0 %1840 }
 0x46d   : > { %v1842_v57 = vrot.slane %v1841_v59, 4 }
 0x46f   : > { %v1843_v11 = vadd.f32 %v1842_v57, %v1841_v59 }
 0x471   : > { %v1844_v61 = vrot.slane %v1843_v11, 2 }
 0x473   : > { %v1845_v63 = vadd.f32 %v1844_v61, %v1843_v11 }
 0x475   : > { %v1846_v29 = vrot.slane %v1845_v63, 1 }
 0x477   : > { %v1847_v0 = vadd.f32 %v1846_v29, %v1845_v63 }
 0x479   : > { %2327 = vpush %v1847_v0 }
 0x4aa   : > { %s2328_s12 = spop %2327 }
 0x4ab   : > { %v1849_v2 = vstv %s2328_s12 }
 0x4ac   : > { %v1850_v5 = vadd.f32 %v1849_v2, %v1837_v26 }
 0x4ae   : > { %1851 = vst [vmem:[%s2557_s6] sm:$0x1] %v1850_v5 }
 0x4af PF: > { %s14_s18 = sadd.s32 1, %s2475_s18   ;;  %s3156_s26 = sld [smem:[#allocation4_spill]] }
 0x4b0   : > { %p11_p2 = scmp.ge.s32.totalorder %s14_s18, 32   ;;  %s3157_s12 = smov %s2463_s15 }
 0x4b1   : > { %s3158_s13 = smov %s2467_s16  ;;  %s3159_s14 = smov %s2471_s17 }
 0x4b2   : > { %s3160_s15 = smov %s3164_s19  ;;  %s3161_s16 = smov %s3168_s20 }
 0x4b3   :  { %13 = sbr.rel (!%p11_p2) target bundleno = 4 (0x4), region = 104 }
 0x4b5   : > { %s3162_s17 = smov %s3156_s26 }

</bundles_post_ra>
